<compile_context>
chip_gen: v7x
topology: tpu7x:2x2x1
jax: 0.10.0
libtpu: 0.0.40
codegen_flags: <defaults>
</compile_context>

<pallas_src>
import functools
import math

import jax
import jax.numpy as jnp
from jax.experimental import pallas as pl
from jax.experimental.pallas import tpu as pltpu


def _pe_add_kernel(x_ref, pe_ref, o_ref):
    # x_ref: (TS, W)   pe_ref: (1, W)   o_ref: (TS, W)
    # Sublane-broadcast add of the single VMEM-resident pe row.
    o_ref[...] = (x_ref[...] + pe_ref[...]).astype(o_ref.dtype)


def make_positional_encoding_table(d_model: int, max_len: int = 5000) -> jnp.ndarray:
    """Builds the `pe` buffer exactly as the PyTorch __init__ (shape (max_len, d_model))."""
    position = jnp.arange(max_len, dtype=jnp.float32)[:, None]            # (max_len, 1)
    div_term = jnp.exp(
        jnp.arange(0, d_model, 2, dtype=jnp.float32) * (-math.log(10000.0) / d_model)
    )                                                                      # (d_model//2,)
    angles = position * div_term                                           # (max_len, d//2)
    pe = jnp.zeros((max_len, d_model), dtype=jnp.float32)
    pe = pe.at[:, 0::2].set(jnp.sin(angles))
    pe = pe.at[:, 1::2].set(jnp.cos(angles))
    # PyTorch stores (max_len, 1, d_model); the middle dim is always broadcast.
    return pe


def _choose_tile_rows(rows: int, row_bytes: int, target_block_bytes: int, sublane: int) -> int:
    """Pick a seq-tile row count near target_block_bytes, sublane-aligned, >=2 grid steps."""
    max_rows = max(1, target_block_bytes // max(row_bytes, 1))
    if max_rows >= rows:
        # Whole array fits one block.  Keep >= 2 grid steps when large enough so the
        # output writeback of tile i overlaps the input DMA of tile i+1.
        if rows >= 4 * sublane:
            return max(sublane, (((rows + 1) // 2) // sublane) * sublane)
        return rows  # tiny: single block equal to full array dims (always legal)
    return max(sublane, (max_rows // sublane) * sublane)


@functools.partial(jax.jit, static_argnames=("target_block_bytes",))
def positional_encoding_forward(
    x: jnp.ndarray, pe: jnp.ndarray, *, target_block_bytes: int = 4 * 1024 * 1024
) -> jnp.ndarray:
    """x: [seq_len, batch, d_model]. Returns same shape/dtype."""
    S, B, D = x.shape
    BD = B * D
    itemsize = jnp.dtype(x.dtype).itemsize
    sublane = max(8, 32 // itemsize)          # 8 for f32, 16 for bf16, 32 for int8/fp8

    # Lane-density fold: pack k consecutive seq rows into the lane axis so the last
    # (lane) dim is a multiple of 128 -> full-rate unmasked vector stores.
    k = 128 // math.gcd(BD, 128)
    fold = k if (k > 1 and S % k == 0) else 1
    rows, width = S // fold, fold * BD

    x2 = x.reshape(rows, width)               # free metadata reshape (row-major contiguous)
    pe_row = pe[:B].astype(x.dtype).reshape(1, BD)   # pe indexed by batch dim (module quirk)
    if fold > 1:
        pe_row = jnp.tile(pe_row, (1, fold))  # each folded seq row sees the same pe row

    row_bytes = width * itemsize
    ts = _choose_tile_rows(rows, row_bytes, target_block_bytes, sublane)
    grid = (pl.cdiv(rows, ts),)

    block_bytes = ts * width * itemsize
    # Double-buffered in + out (~4x block) + pe + slack; capped under v7x's 64 MiB VMEM.
    vmem_limit = int(min(48 * 1024 * 1024, max(16 * 1024 * 1024, 6 * block_bytes)))

    out2 = pl.pallas_call(
        _pe_add_kernel,
        out_shape=jax.ShapeDtypeStruct((rows, width), x.dtype),
        grid=grid,
        in_specs=[
            # x tile: auto double-buffered streaming input.
            # (further sweep on v7x: pipeline_mode=pl.Buffered(3), VMEM budget permitting)
            pl.BlockSpec((ts, width), lambda i: (i, 0)),
            # pe row: constant index_map -> DMA'd once and kept VMEM-resident.
            pl.BlockSpec((1, width), lambda i: (0, 0)),
        ],
        out_specs=pl.BlockSpec((ts, width), lambda i: (i, 0)),
        compiler_params=pltpu.CompilerParams(
            # v7x-only sweep: pltpu.CORE_PARALLEL here to shard seq tiles across both TCs.
            dimension_semantics=(pltpu.PARALLEL,),
            vmem_limit_bytes=vmem_limit,
        ),
    )(x2, pe_row)

    # TODO(synk): training-mode dropout(p=0.1) is stochastic; eval-mode dropout is the
    # identity, which is what we implement here.
    return out2.reshape(S, B, D)


def _reference(x: jnp.ndarray, pe: jnp.ndarray) -> jnp.ndarray:
    # Pure-JAX mirror of the PyTorch code path (with the permutes and the batch-index quirk).
    xt = jnp.transpose(x, (1, 0, 2))                    # [batch, seq, d_model]
    xt = xt + pe[: x.shape[1]][:, None, :]              # pe[:x.size(0)] taken AFTER permute
    return jnp.transpose(xt, (1, 0, 2))                 # [seq, batch, d_model]


if __name__ == "__main__":
    # 1) Module-sized small shape (B*D = 64 < 128 -> exercises the lane-density fold path).
    seq_len, batch, d_model = 8, 2, 32
    x = jax.random.normal(jax.random.PRNGKey(0), (seq_len, batch, d_model), dtype=jnp.float32)
    pe = make_positional_encoding_table(d_model, max_len=5000)
    out = jax.block_until_ready(positional_encoding_forward(x, pe))
    assert out.shape == x.shape and out.dtype == x.dtype
    assert jnp.allclose(out, _reference(x, pe), atol=1e-6, rtol=1e-6)

    # 2) Fold-fallback path (seq not divisible by the fold factor -> unfolded 64-wide layout).
    x_odd = jax.random.normal(jax.random.PRNGKey(1), (9, 2, 32), dtype=jnp.float32)
    out_odd = jax.block_until_ready(positional_encoding_forward(x_odd, pe))
    assert jnp.allclose(out_odd, _reference(x_odd, pe), atol=1e-6, rtol=1e-6)

    # 3) Multi-block pipelined path (forced small tile budget), B*D already lane-dense.
    x_big = jax.random.normal(jax.random.PRNGKey(2), (512, 4, 128), dtype=jnp.float32)
    pe_big = make_positional_encoding_table(128, max_len=5000)
    out_big = jax.block_until_ready(
        positional_encoding_forward(x_big, pe_big, target_block_bytes=64 * 1024)
    )
    assert jnp.allclose(out_big, _reference(x_big, pe_big), atol=1e-6, rtol=1e-6)

    print("KERNEL_OK")
</pallas_src>

<mosaic_0001>
module attributes {stable_mosaic.version = 11 : i64} {
  func.func @_pe_add_kernel(%arg0: i32, %arg1: memref<4x128xf32, #tpu.memory_space<vmem>>, %arg2: memref<1x128xf32, #tpu.memory_space<vmem>>, %arg3: memref<4x128xf32, #tpu.memory_space<vmem>>) attributes {dimension_semantics = [#tpu.dimension_semantics<parallel>], iteration_bounds = array<i64: 1>, scalar_prefetch = 0 : i64, scratch_operands = 0 : i64, tpu.core_type = #tpu.core_type<tc>, window_params = [{transform_indices = @transform_0, window_bounds = array<i64: 4, 128>}, {pipeline_mode = #tpu.pipeline_mode<synchronous>, transform_indices = @transform_1, window_bounds = array<i64: 1, 128>}, {transform_indices = @transform_2, window_bounds = array<i64: 4, 128>}]} {
    %c0 = arith.constant 0 : index
    %c0_0 = arith.constant 0 : index
    %0 = vector.load %arg1[%c0, %c0_0] : memref<4x128xf32, #tpu.memory_space<vmem>>, vector<4x128xf32>
    %c0_1 = arith.constant 0 : index
    %c0_2 = arith.constant 0 : index
    %1 = vector.load %arg2[%c0_1, %c0_2] : memref<1x128xf32, #tpu.memory_space<vmem>>, vector<1x128xf32>
    %2 = vector.broadcast %1 : vector<1x128xf32> to vector<4x128xf32>
    %3 = arith.addf %0, %2 : vector<4x128xf32>
    %c0_3 = arith.constant 0 : index
    %c0_4 = arith.constant 0 : index
    %4 = vector.load %arg3[%c0_3, %c0_4] : memref<4x128xf32, #tpu.memory_space<vmem>>, vector<4x128xf32>
    tpu.vector_store %arg3[%c0_3, %c0_4], %3 {strides = array<i32>} : memref<4x128xf32, #tpu.memory_space<vmem>>, vector<4x128xf32>,
    return
  }
  func.func @transform_0(%arg0: i32) -> (i32, i32) {
    %c0_i32 = arith.constant 0 : i32
    %c0_i32_0 = arith.constant 0 : i32
    return %arg0, %c0_i32 : i32, i32
  }
  func.func @transform_1(%arg0: i32) -> (i32, i32) {
    %c0_i32 = arith.constant 0 : i32
    %c0_i32_0 = arith.constant 0 : i32
    %c0_i32_1 = arith.constant 0 : i32
    return %c0_i32, %c0_i32_0 : i32, i32
  }
  func.func @transform_2(%arg0: i32) -> (i32, i32) {
    %c0_i32 = arith.constant 0 : i32
    %c0_i32_0 = arith.constant 0 : i32
    return %arg0, %c0_i32 : i32, i32
  }
}

</mosaic_0001>

<bundles_post_ra>
// kernel: positional_encoding_forward.1
= control target key start
LH: loop header
LB: loop body
LE: loop exit
PB: predicated region body
PF: predicated region fallthrough
CT: control target
= control target key end

     0   :  { %s50_s0 = inlined_call_operand.vmem [shape: f32[4,128], index: 0, kind: input, shape index: {}]   ;;  %s51_s1 = inlined_call_operand.vmem [shape: f32[1,128], index: 1, kind: input, shape index: {}]   ;;  %s52_s2 = inlined_call_operand.vmem [shape: f32[4,128], index: 2, kind: output, shape index: {}]  }
   0x1   :  { %v11_v0 = vld [vmem:[%s50_s0] sm:$0xf] }
   0x2   :  { %v25_v1 = vld [vmem:[%s51_s1] ss:$0 sm:$0xff] }
   0x3   :  { %v19_v2 = vadd.f32 %v25_v1, %v11_v0 }
   0x5   :  { %20 = vst [vmem:[%s52_s2] sm:$0xf] %v19_v2 }

</bundles_post_ra>
